<compile_context>
chip_gen: v5e
topology: v5e:2x2
jax: 0.10.0
libtpu: 0.0.40
codegen_flags: <defaults>
</compile_context>

<pallas_src>
import functools
import math

import jax
import jax.numpy as jnp
from jax.experimental import pallas as pl
from jax.experimental.pallas import tpu as pltpu


def _round_up(x, m):
    return (x + m - 1) // m * m


def _cdiv(a, b):
    return -(-a // b)


# ----------------------------- Pallas kernel --------------------------------
def outconv_kernel(w_ref, b_ref, x_ref, o_ref):
    # w: (Cout, Cin), b: (Cout, 1) f32, x: (Cin, TR), o: (Cout, TR)
    # One MXU matmul per pixel tile (f32 accumulation) + lane-broadcast bias.
    acc = jnp.dot(w_ref[...], x_ref[...], preferred_element_type=jnp.float32)
    o_ref[...] = (acc + b_ref[...]).astype(o_ref.dtype)


# ----------------------------- tile selection --------------------------------
def _pick_tile_r(p, n_batch, bytes_per_lane, target_step_bytes, tile_vmem_budget):
    """Pixel-tile width: big enough that each grid step moves several MiB
    (amortizing per-step pipeline overhead), small enough that the
    double-buffered (x tile + out tile) pair fits the VMEM budget."""
    tile_r = max(target_step_bytes // bytes_per_lane, 128)
    tile_r = min(tile_r, max(128, tile_vmem_budget // (2 * bytes_per_lane)))
    tile_r = max(128, (tile_r // 128) * 128)          # unmasked lane-dense stores
    tile_r = min(tile_r, _round_up(p, 128))
    # Give the "parallel" grid at least 2 steps so megacore (v7x) can shard it.
    if n_batch * _cdiv(p, tile_r) < 2 and p >= 256:
        tile_r = _round_up(_cdiv(p, 2), 128)
    if tile_r >= p:
        tile_r = p  # full extent: exempt from the 128-divisibility rule
    return tile_r


# ------------------------------- wrapper -------------------------------------
@functools.partial(jax.jit, static_argnames=("compute_dtype", "out_dtype"))
def out_conv_forward(x, weight, bias=None, *, compute_dtype=None, out_dtype=None):
    """Forward of OutConv: Conv{1,2,3}d(in_channels, out_channels, kernel_size=1).

    x            : (N, Cin, *spatial)  -- PyTorch channel-first layout, any ndim.
    weight       : (Cout, Cin, *1s) or (Cout, Cin)
    bias         : (Cout,) or None
    compute_dtype: dtype for x/weight inside the kernel (e.g. jnp.bfloat16 to
                   halve HBM traffic; accumulation + bias stay f32).
    out_dtype    : output dtype (defaults to x.dtype).
    returns      : (N, Cout, *spatial)
    """
    n = int(x.shape[0])
    cin = int(x.shape[1])
    spatial = tuple(int(s) for s in x.shape[2:])
    p = math.prod(spatial) if spatial else 1
    cout = int(weight.shape[0])

    compute_dtype = jnp.dtype(x.dtype if compute_dtype is None else compute_dtype)
    out_dtype = jnp.dtype(x.dtype if out_dtype is None else out_dtype)

    # Collapse spatial dims -- free (metadata-only) for a contiguous NC... array.
    x3 = x.reshape(n, cin, p).astype(compute_dtype)
    w2 = weight.reshape(cout, cin).astype(compute_dtype)
    if bias is None:
        b2 = jnp.zeros((cout, 1), jnp.float32)
    else:
        b2 = bias.astype(jnp.float32).reshape(cout, 1)

    bytes_per_lane = cin * compute_dtype.itemsize + cout * out_dtype.itemsize
    tile_r = _pick_tile_r(
        p, n, bytes_per_lane,
        target_step_bytes=8 * 1024 * 1024,   # ~8 MiB/step -> overhead amortized
        tile_vmem_budget=32 * 1024 * 1024,   # cap on 2x double-buffered tiles
    )
    grid = (n, _cdiv(p, tile_r))

    tiles_bytes = (2 * bytes_per_lane * tile_r
                   + w2.size * w2.dtype.itemsize + b2.size * 4)
    # Explicit VMEM limit: above the v5e 16 MiB scoped default, below the
    # ~48-56 MiB that is safe on v7x's 64 MiB/TC.
    vmem_limit = int(min(48 * 1024 * 1024,
                         max(32 * 1024 * 1024, tiles_bytes + (8 << 20))))

    y3 = pl.pallas_call(
        outconv_kernel,
        out_shape=jax.ShapeDtypeStruct((n, cout, p), out_dtype),
        grid=grid,
        in_specs=[
            pl.BlockSpec((cout, cin), lambda b, i: (0, 0)),   # weight (VMEM-resident)
            pl.BlockSpec((cout, 1), lambda b, i: (0, 0)),     # bias   (VMEM-resident)
            pl.BlockSpec((None, cin, tile_r), lambda b, i: (b, 0, i)),   # x tile
        ],
        out_specs=pl.BlockSpec((None, cout, tile_r), lambda b, i: (b, 0, i)),
        compiler_params=pltpu.CompilerParams(
            dimension_semantics=("parallel", "parallel"),  # megacore-shardable
            vmem_limit_bytes=vmem_limit,
        ),
        cost_estimate=pl.CostEstimate(
            flops=2 * n * p * cin * cout,
            transcendentals=0,
            bytes_accessed=(n * p * bytes_per_lane
                            + w2.size * w2.dtype.itemsize + b2.size * 4),
        ),
    )(w2, b2, x3)

    return y3.reshape((n, cout) + spatial)


# ---------------------------------- main --------------------------------------
if __name__ == "__main__":
    key = jax.random.PRNGKey(0)
    kx, kw, kb = jax.random.split(key, 3)

    # OutConv(ndim=2, in_channels=4, out_channels=2), input NCHW like PyTorch.
    N, C_IN, C_OUT, H, W = 2, 4, 2, 16, 16
    x = jax.random.normal(kx, (N, C_IN, H, W), jnp.float32)
    w = jax.random.normal(kw, (C_OUT, C_IN, 1, 1), jnp.float32) * 0.5  # Conv2d 1x1 weight
    b = jax.random.normal(kb, (C_OUT,), jnp.float32) * 0.1

    w2 = w.reshape(C_OUT, C_IN)

    # f32 path (exact parity with the PyTorch f32 conv).
    out = jax.block_until_ready(out_conv_forward(x, w, b))
    ref = jnp.einsum("nchw,oc->nohw", x, w2) + b.reshape(1, -1, 1, 1)
    ref = jax.block_until_ready(ref)
    assert out.shape == (N, C_OUT, H, W), out.shape
    assert jnp.allclose(out, ref, rtol=1e-5, atol=1e-5), float(jnp.max(jnp.abs(out - ref)))

    # bf16 compute path (halves HBM input traffic; f32 accumulation + bias).
    out_bf = jax.block_until_ready(
        out_conv_forward(x, w, b, compute_dtype=jnp.bfloat16))
    ref_bf = (jnp.einsum("nchw,oc->nohw",
                         x.astype(jnp.bfloat16), w2.astype(jnp.bfloat16),
                         preferred_element_type=jnp.float32)
              + b.reshape(1, -1, 1, 1))
    ref_bf = jax.block_until_ready(ref_bf)
    assert out_bf.shape == (N, C_OUT, H, W), out_bf.shape
    assert jnp.allclose(out_bf, ref_bf, rtol=1e-2, atol=1e-2), \
        float(jnp.max(jnp.abs(out_bf - ref_bf)))

    print("KERNEL_OK")
</pallas_src>

<mosaic_0001>
module attributes {stable_mosaic.version = 11 : i64} {
  func.func @outconv_kernel(%arg0: i32, %arg1: i32, %arg2: memref<2x4xf32, #tpu.memory_space<vmem>>, %arg3: memref<2x1xf32, #tpu.memory_space<vmem>>, %arg4: memref<1x4x256xf32, #tpu.memory_space<vmem>>, %arg5: memref<1x2x256xf32, #tpu.memory_space<vmem>>) attributes {dimension_semantics = [#tpu.dimension_semantics<parallel>, #tpu.dimension_semantics<parallel>], iteration_bounds = array<i64: 2, 1>, scalar_prefetch = 0 : i64, scratch_operands = 0 : i64, tpu.core_type = #tpu.core_type<tc>, window_params = [{pipeline_mode = #tpu.pipeline_mode<synchronous>, transform_indices = @transform_0, window_bounds = array<i64: 2, 4>}, {pipeline_mode = #tpu.pipeline_mode<synchronous>, transform_indices = @transform_1, window_bounds = array<i64: 2, 1>}, {transform_indices = @transform_2, window_bounds = array<i64: 1, 4, 256>}, {transform_indices = @transform_3, window_bounds = array<i64: 1, 2, 256>}]} {
    %c0 = arith.constant 0 : index
    %c0_0 = arith.constant 0 : index
    %0 = vector.load %arg2[%c0, %c0_0] : memref<2x4xf32, #tpu.memory_space<vmem>>, vector<2x4xf32>
    %c0_1 = arith.constant 0 : index
    %c0_2 = arith.constant 0 : index
    %c0_3 = arith.constant 0 : index
    %1 = vector.load %arg4[%c0_1, %c0_2, %c0_3] : memref<1x4x256xf32, #tpu.memory_space<vmem>>, vector<1x4x256xf32>
    %2 = vector.shape_cast %1 : vector<1x4x256xf32> to vector<4x256xf32>
    %cst = arith.constant dense<0.000000e+00> : vector<2x256xf32>
    %3 = tpu.matmul %0, %2, %cst {dimension_numbers = #tpu.dot_dimension_numbers<[1], [0], [0], [1], [0, 0, 1, 1], [], []>} : vector<2x4xf32>, vector<4x256xf32>, vector<2x256xf32> -> vector<2x256xf32>
    %c0_4 = arith.constant 0 : index
    %c0_5 = arith.constant 0 : index
    %4 = vector.load %arg3[%c0_4, %c0_5] : memref<2x1xf32, #tpu.memory_space<vmem>>, vector<2x1xf32>
    %5 = vector.broadcast %4 : vector<2x1xf32> to vector<2x256xf32>
    %6 = arith.addf %3, %5 : vector<2x256xf32>
    %c0_6 = arith.constant 0 : index
    %c0_7 = arith.constant 0 : index
    %c0_8 = arith.constant 0 : index
    %7 = vector.load %arg5[%c0_6, %c0_7, %c0_8] : memref<1x2x256xf32, #tpu.memory_space<vmem>>, vector<1x2x256xf32>
    %8 = vector.shape_cast %7 : vector<1x2x256xf32> to vector<2x256xf32>
    %9 = vector.shape_cast %6 : vector<2x256xf32> to vector<1x2x256xf32>
    tpu.vector_store %arg5[%c0_6, %c0_7, %c0_8], %9 {strides = array<i32>} : memref<1x2x256xf32, #tpu.memory_space<vmem>>, vector<1x2x256xf32>,
    return
  }
  func.func @transform_0(%arg0: i32, %arg1: i32) -> (i32, i32) {
    %c0_i32 = arith.constant 0 : i32
    %c0_i32_0 = arith.constant 0 : i32
    %c0_i32_1 = arith.constant 0 : i32
    return %c0_i32, %c0_i32_0 : i32, i32
  }
  func.func @transform_1(%arg0: i32, %arg1: i32) -> (i32, i32) {
    %c0_i32 = arith.constant 0 : i32
    %c0_i32_0 = arith.constant 0 : i32
    %c0_i32_1 = arith.constant 0 : i32
    return %c0_i32, %c0_i32_0 : i32, i32
  }
  func.func @transform_2(%arg0: i32, %arg1: i32) -> (i32, i32, i32) {
    %c0_i32 = arith.constant 0 : i32
    %c0_i32_0 = arith.constant 0 : i32
    return %arg0, %c0_i32, %arg1 : i32, i32, i32
  }
  func.func @transform_3(%arg0: i32, %arg1: i32) -> (i32, i32, i32) {
    %c0_i32 = arith.constant 0 : i32
    %c0_i32_0 = arith.constant 0 : i32
    return %arg0, %c0_i32, %arg1 : i32, i32, i32
  }
}

</mosaic_0001>

<bundles_post_ra>
// kernel: out_conv_forward.1
= control target key start
LH: loop header
LB: loop body
LE: loop exit
PB: predicated region body
PF: predicated region fallthrough
CT: control target
= control target key end

     0   :  { %s453_s12 = smov 0   ;;  %s455_s13 = smov 0   ;;  %s492_s0 = inlined_call_operand.vmem [shape: f32[2,4], index: 0, kind: input, shape index: {}]   ;;  %s493_s1 = inlined_call_operand.vmem [shape: f32[2,1], index: 1, kind: input, shape index: {}]   ;;  %s494_s2 = inlined_call_operand.vmem [shape: f32[2,4,256], index: 2, kind: input, shape index: {}]   ;;  %s495_s3 = inlined_call_operand.vmem [shape: f32[2,2,256], index: 3, kind: output, shape index: {}]  }
   0x1   :  { %s457_s14 = smov 0  }
   0x2 LB: > { %s25_s15 = sadd.s32 1, %s426_s13  ;;  %p369_p0 = scmp.ge.s32.totalorder %s430_s14, 1  ;;  %s430_s14 = sphi %s457_s14, %s13_s14   ;;  %s426_s13 = sphi %s455_s13, %s497_s13   ;;  %s422_s12 = sphi %s453_s12, %s496_s12  }
   0x3   : > { %p27_p1 = scmp.ge.s32.totalorder %s25_s15, 2  ;;  %p158_p2 = scmp.lt.s32.totalorder %s430_s14, 3 }
   0x5   : > { %s499_s15 = smov (%p27_p1, %s25_s15), 0  ;;  %p159_p3 = pnand %p369_p0, %p158_p2 }
   0x6   : > { %p191_p4 = scmp.lt.s32.totalorder (!%p159_p3), %s422_s12, 1 }
   0x7   : > { %162 = sbr.rel (%p159_p3) target bundleno = 157 (0x9d), region = 32 }
   0xc   : > { %v432_v0 = vmov 0   ;;  %v212_v1 = vld [vmem:[%s493_s1] sm:$0x3]  ;;  %s501_s12 = smov (!%p191_p4, %s422_s12), 1  ;;  %vm226_vm0 = vcmask 1043456   ;;  %vm222_vm1 = vcmask 31744  }
   0xd   : > { %407 = vset.pattern.permute.xlu0 %v432_v0  ;;  %s380_s18 = sshll.u32 %s501_s12, 3  ;;  %v210_v3 = vld [vmem:[%s492_s0] sm:$0x3]  ;;  %s381_s24 = sshll.u32 %s501_s12, 2  ;;  %vm274_vm2 = vcmask 1041408  }
   0xe   : > { %215 = vperm.xlu0 %407, %v212_v1   ;;  %s198_s21 = scalar_lea.vmem %s494_s2, %s380_s18  ;;  %s208_s27 = scalar_lea.vmem %s495_s3, %s381_s24 }
   0xf   : > { %v211_v2 = vld [vmem:[%s198_s21] sm:$0xff] }
  0x10   : > { %219 = vst [vmem:[#allocation1] ss:$2 sm:$0xff] %v211_v2 }
  0x17   : > { %v220_v4 = vld.sshfl [vmem:[#allocation1] sm:$0xff pattern:$0x75316420]  ;;  %v221_v5 = vld.sshfl [vmem:[#allocation1 + $0x8] sm:$0xff pattern:$0x75316420] }
  0x18   : > { %374 = vmatpush.msk.msra.mxu0 %vm226_vm0, %v220_v4  ;;  %376 = vmatpush.msk.msra.mxu1 %vm226_vm0, %v221_v5 }
  0x19   : > { %375 = vmatmul.msk.f32.vlgmr.msra.gmra.mxu0 %vm222_vm1, %v210_v3  ;;  %377 = vmatmul.msk.f32.vlgmr.msra.gmra.mxu1 %vm222_vm1, %v210_v3 }
  0x80   : > { %v216_v6 = vpop.permute.xlu0 %215 }
  0x96   : > { %v248_v7 = vpop.f32.mrf.mxu0  ;;  %v268_v8 = vpop.f32.mrf.mxu1 }
  0x97   : > { %v269_v9 = vadd.f32 %v268_v8, %v216_v6  ;;  %v249_v10 = vadd.f32 %v248_v7, %v216_v6 }
  0x99   : > { %v273_v11 = vrot.slane %v269_v9, 6 }
  0x9b   : > { %v275_v12 = vsel %vm274_vm2, %v249_v10, %v273_v11 }
  0x9c   : > { %277 = vst [vmem:[%s208_s27] sm:$0xf] %v275_v12 }
  0x9d PF: > { %s13_s14 = sadd.s32 1, %s430_s14   ;;  %s496_s12 = smov %s426_s13 }
  0x9e   : > { %p10_p5 = scmp.ge.s32.totalorder %s13_s14, 4   ;;  %s497_s13 = smov %s499_s15 }
  0xa0   :  { %12 = sbr.rel (!%p10_p5) target bundleno = 2 (0x2), region = 62 }

</bundles_post_ra>
